<compile_context>
chip_gen: v6e
topology: v6e:2x2x1
jax: 0.10.0
libtpu: 0.0.40
codegen_flags: <defaults>
</compile_context>

<pallas_src>
import jax
import jax.numpy as jnp
from jax.experimental import pallas as pl
from jax.experimental.pallas import tpu as pltpu

_LANE_CANDIDATES = (1024, 512, 256, 128)   # widest lane-dense slab that divides n
_MIN_LANES = 128
_TARGET_TILE_BYTES = 8 * 1024 * 1024       # ~8 MiB per input block (per buffer)
_VMEM_LIMIT_BYTES = 48 * 1024 * 1024       # 2x(in+out)x8MiB = 32 MiB + headroom
_MIN_GRID_STEPS = 4                        # let megacore / 2-TC chips shard the axis


def _elish_kernel(x_ref, o_ref):
    x = x_ref[...].astype(jnp.float32)
    # Single EUP exp for both branches; exp(-|x|) <= 1, so it never overflows.
    e = jnp.exp(-jnp.abs(x))
    # Exact reciprocal (accuracy); switch to approx=True only if VALU-bound on v7x.
    inv = pl.reciprocal(1.0 + e, approx=False)
    #   x >= 0: e = exp(-x), sigmoid(x) = 1/(1+e)       -> y = x * inv
    #   x <  0: e = exp(x),  sigmoid(x) = e/(1+e)       -> y = (e-1) * e * inv
    # Select the numerator first so there is a single multiply by inv.
    num = jnp.where(x >= 0, x, (e - 1.0) * e)
    o_ref[...] = (num * inv).astype(o_ref.dtype)


def _pick_lanes(n: int):
    """Largest 128-multiple lane width that divides n; else pad to 128 lanes."""
    for lanes in _LANE_CANDIDATES:
        if n >= lanes and n % lanes == 0:
            return lanes, 0
    lanes = _MIN_LANES
    return lanes, (-n) % lanes


def elish(x: jax.Array) -> jax.Array:
    """Elementwise ELiSH, matching the PyTorch module's forward semantics."""
    orig_shape = x.shape
    orig_dtype = x.dtype
    n = x.size
    if n == 0:
        return x

    itemsize = jnp.dtype(orig_dtype).itemsize
    lanes, pad = _pick_lanes(n)

    flat = x.reshape(-1)                     # metadata-only for contiguous input
    if pad:                                  # rare fallback; ELiSH(0) == 0
        flat = jnp.pad(flat, (0, pad))
    rows = (n + pad) // lanes
    x2d = flat.reshape(rows, lanes)

    # Minimum legal sublane tile for this dtype (f32: 8, bf16: 16, int8/fp8: 32).
    sublane = max(8, 32 // itemsize)

    # Row tile sized for ~8 MiB per input block, capped so the grid keeps at
    # least _MIN_GRID_STEPS steps (when rows allow) for cross-core sharding.
    bytes_per_row = lanes * itemsize
    row_tile = min(max(1, _TARGET_TILE_BYTES // bytes_per_row), rows)
    if rows >= _MIN_GRID_STEPS * sublane:
        row_tile = min(row_tile, pl.cdiv(rows, _MIN_GRID_STEPS))
    row_tile = max(row_tile - row_tile % sublane, sublane)
    if row_tile >= rows:
        row_tile = rows                      # full dim -> always layout-legal
    grid = (pl.cdiv(rows, row_tile),)        # ragged last block is masked by Pallas

    out2d = pl.pallas_call(
        _elish_kernel,
        out_shape=jax.ShapeDtypeStruct((rows, lanes), orig_dtype),
        grid_spec=pltpu.PrefetchScalarGridSpec(
            num_scalar_prefetch=0,
            grid=grid,
            in_specs=[pl.BlockSpec((row_tile, lanes), lambda i: (i, 0))],
            out_specs=pl.BlockSpec((row_tile, lanes), lambda i: (i, 0)),
        ),
        compiler_params=pltpu.CompilerParams(
            # "parallel" lets the grid axis be sharded across TensorCores on
            # megacore/v7x; pltpu.CORE_PARALLEL is a possible sweep candidate.
            dimension_semantics=("parallel",),
            vmem_limit_bytes=_VMEM_LIMIT_BYTES,
        ),
        cost_estimate=pl.CostEstimate(
            flops=6 * n,
            transcendentals=n,
            bytes_accessed=2 * n * itemsize,
        ),
        # NOTE: input_output_aliases={0: 0} would halve peak HBM footprint, but
        # without guaranteed buffer donation at the jit boundary XLA inserts a
        # defensive copy (extra traffic for a mem-bound op), so it is omitted.
    )(x2d)

    if pad:
        return out2d.reshape(-1)[:n].reshape(orig_shape)
    return out2d.reshape(orig_shape)         # metadata-only reshape back


def _elish_ref(x):
    xf = x.astype(jnp.float32)
    sig = jax.nn.sigmoid(xf)
    return jnp.where(xf >= 0, xf * sig, (jnp.exp(xf) - 1.0) * sig).astype(x.dtype)


if __name__ == "__main__":
    key = jax.random.PRNGKey(0)

    # Small NCHW input consistent with the module's (N, *) contract.
    x = jax.random.normal(key, (2, 4, 16, 16), dtype=jnp.float32)
    y = elish(x)
    jax.block_until_ready(y)
    y_ref = _elish_ref(x)
    assert y.shape == x.shape and y.dtype == x.dtype
    assert jnp.allclose(y, y_ref, atol=1e-5, rtol=1e-5)

    # Odd size exercising the padded / ragged fallback path.
    x2 = jax.random.normal(jax.random.PRNGKey(1), (3, 5, 7), dtype=jnp.float32)
    y2 = elish(x2)
    jax.block_until_ready(y2)
    assert y2.shape == x2.shape and y2.dtype == x2.dtype
    assert jnp.allclose(y2, _elish_ref(x2), atol=1e-5, rtol=1e-5)

    # Shape whose element count forces a multi-step grid (>= 4 blocks).
    x3 = jax.random.normal(jax.random.PRNGKey(2), (2, 8, 64, 64), dtype=jnp.float32)
    y3 = elish(x3)
    jax.block_until_ready(y3)
    assert y3.shape == x3.shape and y3.dtype == x3.dtype
    assert jnp.allclose(y3, _elish_ref(x3), atol=1e-5, rtol=1e-5)

    print("KERNEL_OK")
</pallas_src>

<mosaic_0001>
module attributes {stable_mosaic.version = 11 : i64} {
  func.func @_elish_kernel(%arg0: i32, %arg1: memref<2x1024xf32, #tpu.memory_space<vmem>>, %arg2: memref<2x1024xf32, #tpu.memory_space<vmem>>) attributes {dimension_semantics = [#tpu.dimension_semantics<parallel>], iteration_bounds = array<i64: 1>, scalar_prefetch = 0 : i64, scratch_operands = 0 : i64, tpu.core_type = #tpu.core_type<tc>, window_params = [{transform_indices = @transform_0, window_bounds = array<i64: 2, 1024>}, {transform_indices = @transform_1, window_bounds = array<i64: 2, 1024>}]} {
    %c0 = arith.constant 0 : index
    %c0_0 = arith.constant 0 : index
    %0 = vector.load %arg1[%c0, %c0_0] : memref<2x1024xf32, #tpu.memory_space<vmem>>, vector<2x1024xf32>
    %1 = math.absf %0 : vector<2x1024xf32>
    %cst = arith.constant 0.000000e+00 : f32
    %2 = vector.broadcast %cst : f32 to vector<2x1024xf32>
    %3 = arith.subf %2, %1 : vector<2x1024xf32>
    %4 = math.exp %3 : vector<2x1024xf32>
    %cst_1 = arith.constant 1.000000e+00 : f32
    %5 = vector.broadcast %cst_1 : f32 to vector<2x1024xf32>
    %6 = arith.addf %5, %4 : vector<2x1024xf32>
    %7 = tpu.reciprocal %6 : vector<2x1024xf32> -> vector<2x1024xf32>
    %cst_2 = arith.constant 0.000000e+00 : f32
    %8 = vector.broadcast %cst_2 : f32 to vector<2x1024xf32>
    %9 = arith.cmpf oge, %0, %8 : vector<2x1024xf32>
    %cst_3 = arith.constant 1.000000e+00 : f32
    %10 = vector.broadcast %cst_3 : f32 to vector<2x1024xf32>
    %11 = arith.subf %4, %10 : vector<2x1024xf32>
    %12 = arith.mulf %11, %4 : vector<2x1024xf32>
    %13 = arith.select %9, %0, %12 : vector<2x1024xi1>, vector<2x1024xf32>
    %14 = arith.mulf %13, %7 : vector<2x1024xf32>
    %c0_4 = arith.constant 0 : index
    %c0_5 = arith.constant 0 : index
    %15 = vector.load %arg2[%c0_4, %c0_5] : memref<2x1024xf32, #tpu.memory_space<vmem>>, vector<2x1024xf32>
    tpu.vector_store %arg2[%c0_4, %c0_5], %14 {strides = array<i32>} : memref<2x1024xf32, #tpu.memory_space<vmem>>, vector<2x1024xf32>,
    return
  }
  func.func @transform_0(%arg0: i32) -> (i32, i32) {
    %c0_i32 = arith.constant 0 : i32
    %c0_i32_0 = arith.constant 0 : i32
    return %arg0, %c0_i32 : i32, i32
  }
  func.func @transform_1(%arg0: i32) -> (i32, i32) {
    %c0_i32 = arith.constant 0 : i32
    %c0_i32_0 = arith.constant 0 : i32
    return %arg0, %c0_i32 : i32, i32
  }
}

</mosaic_0001>

<bundles_post_ra>
// kernel: tpu_custom_call.1
= control target key start
LH: loop header
LB: loop body
LE: loop exit
PB: predicated region body
PF: predicated region fallthrough
CT: control target
= control target key end

     0   :  { %6 = vsyncpa [#allocation3], 0  ;;  %s136_s0 = inlined_call_operand.hbm [shape: f32[2,1024], index: 0, kind: input, shape index: {}]   ;;  %s137_s1 = inlined_call_operand.hbm [shape: f32[2,1024], index: 1, kind: output, shape index: {}]  }
   0x1   :  { %7 = vsyncpa [#allocation4], 0  ;;  %s118_s6 = smov [#allocation2]  }
   0x2   :  { %s14_s7 = sshll.u32 %s118_s6, 4  ;;  %s15_s7 = int_to_ptr.vmem [resolvable:$true] %s14_s7 }
   0x3   :  { %s82_s8 = scalar_lea.vmem %s15_s7, 256  ;;  %p87_p1 = scmp.lt.s32.totalorder %s15_s7, %s15_s7 }
   0x4   :  { %p83_p0 = scmp.ne.s32.totalorder %s15_s7, %s82_s8  ;;  %p88_p2 = scmp.lt.s32.totalorder %s82_s8, %s82_s8 }
   0x6   :  { %p89_p3 = por %p88_p2, %p87_p1 }
   0x8   :  { %p90_p4 = pnand %p89_p3, %p83_p0 }
   0xa   :  { %93 = shalt.err (!%p90_p4)
}
   0xb   :  { %17 = dma.hbm_to_vmem [thread:$0]  %s136_s0, 256, %s15_s7, [#allocation3]  }
   0xc   :  { %114 = dma.done.wait [#allocation3], 256  }
   0xd   :  { %115 = vsyncadd [#allocation3], 4294967040  ;;  %v21_v0 = vld [vmem:[#allocation2] sm:$0xff]  ;;  %v22_v1 = vld [vmem:[#allocation2 + $0x8] sm:$0xff]  ;;  %s119_s0 = smov [#allocation5]  }
   0xe   :  { %v23_v2 = vand.u32 2147483647, %v21_v0  ;;  %v24_v3 = vand.u32 2147483647, %v22_v1  ;;  %vm35_vm0 = vcmp.ge.f32.partialorder %v21_v0, 0.0  ;;  %vm36_vm1 = vcmp.ge.f32.partialorder %v22_v1, 0.0 }
   0xf   :  { %s53_s11 = sshll.u32 %s119_s0, 4  ;;  %s54_s11 = int_to_ptr.vmem [resolvable:$true] %s53_s11 }
  0x10   :  { %v25_v4 = vsub.f32 0.0, %v23_v2  ;;  %v26_v5 = vsub.f32 0.0, %v24_v3  ;;  %s94_s12 = scalar_lea.vmem %s54_s11, 256  ;;  %p99_p6 = scmp.lt.s32.totalorder %s54_s11, %s54_s11 }
  0x11   :  { %p95_p5 = scmp.ne.s32.totalorder %s54_s11, %s94_s12  ;;  %p100_p7 = scmp.lt.s32.totalorder %s94_s12, %s94_s12 }
  0x12   :  { %v27_v6 = vmul.f32 1.442695, %v25_v4  ;;  %v29_v7 = vmul.f32 1.442695, %v26_v5 }
  0x13   :  { %p101_p8 = por %p100_p7, %p99_p6 }
  0x14   :  { %66 = vpow2.f32 %v27_v6 }
  0x15   :  { %68 = vpow2.f32 %v29_v7  ;;  %p102_p9 = pnand %p101_p8, %p95_p5 }
  0x21   :  { %v67_v8 = vpop.eup %66 }
  0x22   :  { %v69_v9 = vpop.eup %68  ;;  %v31_v10 = vadd.f32 1.0, %v67_v8  ;;  %v62_v12 = vadd.f32 -1.0, %v67_v8 }
  0x23   :  { %v32_v11 = vadd.f32 1.0, %v69_v9  ;;  %v63_v13 = vadd.f32 -1.0, %v69_v9 }
  0x24   :  { %70 = vrcp.f32 %v31_v10  ;;  %v39_v14 = vmul.f32 %v67_v8, %v62_v12 }
  0x25   :  { %72 = vrcp.f32 %v32_v11  ;;  %v40_v15 = vmul.f32 %v69_v9, %v63_v13 }
  0x26   :  { %v41_v16 = vsel %vm35_vm0, %v21_v0, %v39_v14 }
  0x27   :  { %v42_v17 = vsel %vm36_vm1, %v22_v1, %v40_v15 }
  0x31   :  { %v71_v18 = vpop.eup %70 }
  0x32   :  { %v73_v19 = vpop.eup %72  ;;  %v43_v20 = vmul.f32 %v71_v18, %v41_v16 }
  0x33   :  { %v44_v21 = vmul.f32 %v73_v19, %v42_v17 }
  0x34   :  { %45 = vst [vmem:[#allocation5] sm:$0xff] %v43_v20 }
  0x35   :  { %46 = vst [vmem:[#allocation5 + $0x8] sm:$0xff] %v44_v21 }
  0x36   :  { %105 = shalt.err (!%p102_p9)
}
  0x37   :  { %56 = dma.vmem_to_hbm [thread:$0]  %s54_s11, 256, %s137_s1, [#allocation4]  }
  0x38   :  { %116 = dma.done.wait [#allocation4], 256  }
  0x39   :  { %117 = vsyncadd [#allocation4], 4294967040 }
  0x3a   :  { %60 = vsyncpa [#allocation3], 1 }
  0x3b   :  { %61 = vsyncpa [#allocation4], 1 }

</bundles_post_ra>
